<compile_context>
chip_gen: v5e
topology: v5e:2x2
jax: 0.10.0
libtpu: 0.0.40
codegen_flags: <defaults>
</compile_context>

<pallas_src>
import functools

import jax
import jax.numpy as jnp
from jax.experimental import pallas as pl
from jax.experimental.pallas import tpu as pltpu

_LANE = 128


def _round_up(x, m):
    return ((x + m - 1) // m) * m


def _round_down(x, m):
    return (x // m) * m


def _chip_config():
    """Returns (block_bytes_budget, vmem_limit_bytes, force_two_steps)."""
    try:
        vmem = pltpu.get_tpu_info().vmem_capacity_bytes
    except Exception:
        vmem = 64 * 1024 * 1024  # conservative fallback (v7x-like)
    if vmem >= 100 * 1024 * 1024:
        # v5e / v6e: 128 MiB physical VMEM, single TensorCore.
        return 8 * 1024 * 1024, 64 * 1024 * 1024, False
    # v7x-like: 64 MiB physical VMEM, 2 TensorCores -> want >= 2 grid steps.
    return 4 * 1024 * 1024, 32 * 1024 * 1024, True


def _pick_tile_rows(rows, padded_row_bytes, pack, budget, force_split):
    """Rows per block: as large as the (padded-footprint) budget allows,
    a multiple of the sublane pack, capped at the rounded-up total.  On v7x
    also split into >= 2 roughly balanced steps when there is enough work."""
    t = max(pack, _round_down(budget // max(padded_row_bytes, 1), pack))
    t = min(t, _round_up(rows, pack))
    if force_split and rows >= 2 * pack:
        t = min(t, _round_up(pl.cdiv(rows, 2), pack))
    return t


# ---------------------------- single-pass kernel ----------------------------

def _hemax_kernel(x_ref, o_ref, *, beta):
    x = x_ref[...]
    m = jnp.max(x, axis=-1, keepdims=True)          # per-(n,c) spatial max
    o_ref[...] = jnp.where(x == m, x * beta, x).astype(o_ref.dtype)


# ------------------- two-pass kernels (very large H*W) ----------------------

def _rowmax_kernel(x_ref, m_ref, *, hw, tile_hw):
    k = pl.program_id(1)

    @pl.when(k == 0)
    def _():
        m_ref[...] = jnp.full(m_ref.shape, -jnp.inf, m_ref.dtype)

    x = x_ref[...].astype(jnp.float32)
    # Mask the padded hw tail so garbage never folds into the max.
    col = k * tile_hw + jax.lax.broadcasted_iota(jnp.int32, x.shape, 1)
    x = jnp.where(col < hw, x, -jnp.inf)
    m_ref[...] = jnp.maximum(m_ref[...], jnp.max(x, axis=-1, keepdims=True))


def _apply_kernel(x_ref, m_ref, o_ref, *, beta):
    x = x_ref[...]
    m = m_ref[...]                                   # (tile_rows, 1) float32
    o_ref[...] = jnp.where(x.astype(jnp.float32) == m, x * beta, x).astype(o_ref.dtype)


# ---------------------------------- wrapper ---------------------------------

def hemax_block(x: jax.Array, beta: float = 1.5, *, in_place: bool = False,
                max_block_bytes: int | None = None) -> jax.Array:
    """x: (N, C, H, W). Returns same shape/dtype.

    in_place=True adds input_output_aliases={0: 0} (mirrors the PyTorch
    in-place update); only pays off if x is donated in the surrounding jit,
    otherwise XLA inserts a defensive copy (still correct).
    max_block_bytes overrides the per-block VMEM budget (testing hook).
    """
    N, C, H, W = x.shape
    rows, hw = N * C, H * W
    itemsize = jnp.dtype(x.dtype).itemsize
    pack = max(8, 32 // max(itemsize, 1))            # sublanes: f32->8, bf16->16, int8->32

    budget, vmem_limit, force_split = _chip_config()
    if max_block_bytes is not None:
        budget = max_block_bytes

    aliases = {0: 0} if in_place else {}
    padded_row_bytes = _round_up(hw, _LANE) * itemsize
    x2 = x.reshape(rows, hw)                          # contiguous -> no copy

    if padded_row_bytes * pack <= budget:
        # -------- common path: one streaming pass, reduce along lanes -------
        tile_rows = _pick_tile_rows(rows, padded_row_bytes, pack, budget, force_split)
        out2 = pl.pallas_call(
            functools.partial(_hemax_kernel, beta=float(beta)),
            out_shape=jax.ShapeDtypeStruct((rows, hw), x.dtype),
            grid_spec=pltpu.PrefetchScalarGridSpec(
                num_scalar_prefetch=0,
                grid=(pl.cdiv(rows, tile_rows),),
                in_specs=[pl.BlockSpec((tile_rows, hw), lambda i: (i, 0))],
                out_specs=pl.BlockSpec((tile_rows, hw), lambda i: (i, 0)),
            ),
            compiler_params=pltpu.CompilerParams(
                dimension_semantics=("parallel",),
                vmem_limit_bytes=vmem_limit,
            ),
            input_output_aliases=aliases,
        )(x2)
        return out2.reshape(N, C, H, W)

    # ------- guard path: H*W too large for one block -> two tiled passes ----
    tile_rows = pack
    tile_hw = max(_LANE, _round_down(budget // (tile_rows * itemsize), _LANE))
    tile_hw = min(tile_hw, _round_up(hw, _LANE))
    row_grid = pl.cdiv(rows, tile_rows)
    hw_grid = pl.cdiv(hw, tile_hw)

    # Pass 1: running per-row max (output-resident accumulator over hw axis).
    maxv = pl.pallas_call(
        functools.partial(_rowmax_kernel, hw=hw, tile_hw=tile_hw),
        out_shape=jax.ShapeDtypeStruct((rows, 1), jnp.float32),
        grid_spec=pltpu.PrefetchScalarGridSpec(
            num_scalar_prefetch=0,
            grid=(row_grid, hw_grid),
            in_specs=[pl.BlockSpec((tile_rows, tile_hw), lambda i, k: (i, k))],
            out_specs=pl.BlockSpec((tile_rows, 1), lambda i, k: (i, 0)),
        ),
        compiler_params=pltpu.CompilerParams(
            dimension_semantics=("parallel", "arbitrary"),
            vmem_limit_bytes=vmem_limit,
        ),
    )(x2)

    # Pass 2: elementwise apply (independent tiles on both axes).
    out2 = pl.pallas_call(
        functools.partial(_apply_kernel, beta=float(beta)),
        out_shape=jax.ShapeDtypeStruct((rows, hw), x.dtype),
        grid_spec=pltpu.PrefetchScalarGridSpec(
            num_scalar_prefetch=0,
            grid=(row_grid, hw_grid),
            in_specs=[pl.BlockSpec((tile_rows, tile_hw), lambda i, k: (i, k)),
                      pl.BlockSpec((tile_rows, 1), lambda i, k: (i, 0))],
            out_specs=pl.BlockSpec((tile_rows, tile_hw), lambda i, k: (i, k)),
        ),
        compiler_params=pltpu.CompilerParams(
            dimension_semantics=("parallel", "parallel"),
            vmem_limit_bytes=vmem_limit,
        ),
        input_output_aliases=aliases,
    )(x2, maxv)
    return out2.reshape(N, C, H, W)


def hemax_ref(x: jax.Array, beta: float = 1.5) -> jax.Array:
    """Plain-JAX reference matching the PyTorch forward."""
    N, C, H, W = x.shape
    m = jnp.max(x.reshape(N, C, -1), axis=2).reshape(N, C, 1, 1)
    return jnp.where(x == m, x * beta, x)


if __name__ == "__main__":
    key = jax.random.PRNGKey(0)
    k1, k2, k3 = jax.random.split(key, 3)

    # Case 1: lane-dense spatial dim (H*W = 256), single-pass path.
    x1 = jax.random.normal(k1, (2, 4, 16, 16), dtype=jnp.float32)
    ref1 = hemax_ref(x1, beta=1.5)
    out1 = jax.block_until_ready(hemax_block(x1, beta=1.5))
    assert out1.shape == x1.shape and out1.dtype == x1.dtype
    assert jnp.allclose(out1, ref1, atol=1e-6, rtol=1e-6), "mismatch (single-pass, hw=256)"

    # Case 2: lane-sparse spatial dim (H*W = 49), natural layout (no transposes).
    x2 = jax.random.normal(k2, (4, 64, 7, 7), dtype=jnp.float32)
    ref2 = hemax_ref(x2, beta=1.5)
    out2 = jax.block_until_ready(hemax_block(x2, beta=1.5))
    assert out2.shape == x2.shape and out2.dtype == x2.dtype
    assert jnp.allclose(out2, ref2, atol=1e-6, rtol=1e-6), "mismatch (single-pass, hw=49)"

    # Case 3: bfloat16 (exercises the .astype(o_ref.dtype) store path).
    x3 = jax.random.normal(k3, (2, 4, 8, 8), dtype=jnp.bfloat16)
    ref3 = hemax_ref(x3, beta=1.5)
    out3 = jax.block_until_ready(hemax_block(x3, beta=1.5))
    assert out3.shape == x3.shape and out3.dtype == x3.dtype
    assert jnp.allclose(out3.astype(jnp.float32), ref3.astype(jnp.float32)), "mismatch (bf16)"

    # Case 4: force the large-H*W two-pass guard path via the budget override.
    out4 = jax.block_until_ready(hemax_block(x1, beta=1.5, max_block_bytes=4096))
    assert jnp.allclose(out4, ref1, atol=1e-6, rtol=1e-6), "mismatch (two-pass guard path)"

    # Case 5: in-place variant (aliased output) under jit with donation.
    x1_copy = x1 + 0.0
    out5 = jax.block_until_ready(
        jax.jit(functools.partial(hemax_block, beta=1.5, in_place=True),
                donate_argnums=(0,))(x1_copy))
    assert jnp.allclose(out5, ref1, atol=1e-6, rtol=1e-6), "mismatch (in-place aliased)"

    print("KERNEL_OK")
</pallas_src>

<mosaic_0001>
module attributes {stable_mosaic.version = 11 : i64} {
  func.func @_hemax_kernel(%arg0: i32, %arg1: memref<8x256xf32, #tpu.memory_space<vmem>>, %arg2: memref<8x256xf32, #tpu.memory_space<vmem>>) attributes {dimension_semantics = [#tpu.dimension_semantics<parallel>], iteration_bounds = array<i64: 1>, scalar_prefetch = 0 : i64, scratch_operands = 0 : i64, tpu.core_type = #tpu.core_type<tc>, window_params = [{transform_indices = @transform_0, window_bounds = array<i64: 8, 256>}, {transform_indices = @transform_1, window_bounds = array<i64: 8, 256>}]} {
    %c0 = arith.constant 0 : index
    %c0_0 = arith.constant 0 : index
    %0 = vector.load %arg1[%c0, %c0_0] : memref<8x256xf32, #tpu.memory_space<vmem>>, vector<8x256xf32>
    %cst = arith.constant dense<0xFF800000> : vector<8xf32>
    %1 = vector.multi_reduction <maximumf>, %0, %cst [1] : vector<8x256xf32> to vector<8xf32>
    %2 = vector.shape_cast %1 : vector<8xf32> to vector<8x1xf32>
    %3 = vector.broadcast %2 : vector<8x1xf32> to vector<8x256xf32>
    %4 = arith.cmpf oeq, %0, %3 : vector<8x256xf32>
    %cst_1 = arith.constant 1.500000e+00 : f32
    %5 = vector.broadcast %cst_1 : f32 to vector<8x256xf32>
    %6 = arith.mulf %0, %5 : vector<8x256xf32>
    %7 = arith.select %4, %6, %0 : vector<8x256xi1>, vector<8x256xf32>
    %c0_2 = arith.constant 0 : index
    %c0_3 = arith.constant 0 : index
    %8 = vector.load %arg2[%c0_2, %c0_3] : memref<8x256xf32, #tpu.memory_space<vmem>>, vector<8x256xf32>
    tpu.vector_store %arg2[%c0_2, %c0_3], %7 {strides = array<i32>} : memref<8x256xf32, #tpu.memory_space<vmem>>, vector<8x256xf32>,
    return
  }
  func.func @transform_0(%arg0: i32) -> (i32, i32) {
    %c0_i32 = arith.constant 0 : i32
    %c0_i32_0 = arith.constant 0 : i32
    return %arg0, %c0_i32 : i32, i32
  }
  func.func @transform_1(%arg0: i32) -> (i32, i32) {
    %c0_i32 = arith.constant 0 : i32
    %c0_i32_0 = arith.constant 0 : i32
    return %arg0, %c0_i32 : i32, i32
  }
}

</mosaic_0001>

<bundles_post_ra>
// kernel: tpu_custom_call.1
= control target key start
LH: loop header
LB: loop body
LE: loop exit
PB: predicated region body
PF: predicated region fallthrough
CT: control target
= control target key end

     0   :  { %6 = vsyncpa [#allocation3], 0  ;;  %s125_s0 = inlined_call_operand.hbm [shape: f32[8,256], index: 0, kind: input, shape index: {}]   ;;  %s126_s1 = inlined_call_operand.hbm [shape: f32[8,256], index: 1, kind: output, shape index: {}]  }
   0x1   :  { %7 = vsyncpa [#allocation4], 0  ;;  %s13_s8 = sshll.u32 %s125_s0, 4  ;;  %s107_s9 = smov [#allocation2]   ;;  %s14_s8 = int_to_ptr.hbm [resolvable:$true] %s13_s8 }
   0x2   :  { %s15_s10 = sshll.u32 %s107_s9, 4  ;;  %s16_s10 = int_to_ptr.vmem [resolvable:$true] %s15_s10 }
   0x3   :  { %18 = dma.hbm_to_vmem [thread:$0]  %s14_s8, 256, %s16_s10, [#allocation3]  }
   0x4   :  { %103 = dma.done.wait [#allocation3], 256  }
   0x5   :  { %104 = vsyncadd [#allocation3], 4294967040  ;;  %v23_v0 = vld [vmem:[#allocation2] sm:$0xff]  ;;  %v24_v1 = vld [vmem:[#allocation2 + $0x8] sm:$0xff]  ;;  %s108_s11 = smov [#allocation5]   ;;  %s43_s15 = sshll.u32 %s126_s1, 4  ;;  %s44_s15 = int_to_ptr.hbm [resolvable:$true] %s43_s15 }
   0x6   :  { %v25_v2 = vmax.f32 %v23_v0, %v24_v1  ;;  %v30_v3 = vmul.f32 1.5, %v23_v0  ;;  %v31_v4 = vmul.f32 1.5, %v24_v1  ;;  %s41_s12 = sshll.u32 %s108_s11, 4  ;;  %s42_s12 = int_to_ptr.vmem [resolvable:$true] %s41_s12 }
   0x8   :  { %26 = vmax.xlane.f32.xlu0 %v25_v2 }
  0x7b   :  { %v27_v5 = vpop.xlane.xlu0 %26 }
  0x7c   :  { %vm28_vm0 = vcmp.eq.f32.partialorder %v23_v0, %v27_v5  ;;  %vm29_vm1 = vcmp.eq.f32.partialorder %v24_v1, %v27_v5 }
  0x7d   :  { %v32_v6 = vsel %vm28_vm0, %v30_v3, %v23_v0  ;;  %v33_v7 = vsel %vm29_vm1, %v31_v4, %v24_v1 }
  0x7e   :  { %34 = vst [vmem:[#allocation5] sm:$0xff] %v32_v6 }
  0x7f   :  { %35 = vst [vmem:[#allocation5 + $0x8] sm:$0xff] %v33_v7 }
  0x80   :  { %46 = dma.vmem_to_hbm [thread:$0]  %s42_s12, 256, %s44_s15, [#allocation4]  }
  0x81   :  { %105 = dma.done.wait [#allocation4], 256  }
  0x82   :  { %106 = vsyncadd [#allocation4], 4294967040 }
  0x83   :  { %51 = vsyncpa [#allocation3], 1 }
  0x84   :  { %52 = vsyncpa [#allocation4], 1 }

</bundles_post_ra>
